<compile_context>
chip_gen: v7x
topology: tpu7x:2x2x1
jax: 0.10.0
libtpu: 0.0.40
codegen_flags: <defaults>
</compile_context>

<pallas_src>
import jax
import jax.numpy as jnp
from jax.experimental import pallas as pl
from jax.experimental.pallas import tpu as pltpu

LANE = 128  # TPU lane width


def _round_up(x, m):
    return ((x + m - 1) // m) * m


def _tile_geom(B, block_b):
    """Batch-tile geometry shared by the gather glue and the Pallas call."""
    TB = min(block_b, _round_up(B, LANE))
    if _round_up(B, TB) > TB:
        # multi-tile: TB//128 must be a multiple of 8 for the packed out spec
        TB = _round_up(TB, 8 * LANE)
    B_pad = _round_up(B, TB)
    return TB, B_pad


# ---------------------------------------------------------------------------
# Pallas kernel: the deep-MLP hot path (per batch tile of TB rows)
#   x_ref  : (TB, D)        bf16  deep embedding tile (fm_bias column folded away)
#   w1_ref : (D, H1)        bf16
#   b1_ref : (1, H1)        f32   (b1 + fm_bias * W1[0,:])
#   w2_ref : (H1, H2)       bf16
#   b2_ref : (1, H2)        f32
#   w3_ref : (H2, 128)      bf16  (W3 @ ones(C,1), broadcast over 128 lanes)
#   b3_ref : (1, 128)       f32   (sum(b3), broadcast)
#   o_ref  : (TB//128, 128) f32   packed per-row scalars (lane j of row g is
#                                 the result for batch row g*128 + j)
# ---------------------------------------------------------------------------
def _make_fnn_mlp_kernel(G):
    def fnn_mlp_kernel(x_ref, w1_ref, b1_ref, w2_ref, b2_ref, w3_ref, b3_ref,
                       o_ref):
        x = x_ref[...]
        h1 = jnp.tanh(
            jnp.dot(x, w1_ref[...], preferred_element_type=jnp.float32)
            + b1_ref[...]
        )
        h2 = jnp.tanh(
            jnp.dot(h1.astype(jnp.bfloat16), w2_ref[...],
                    preferred_element_type=jnp.float32) + b2_ref[...]
        )
        # (TB, 128) f32; every lane of a row holds the same per-row scalar
        # (class-sum already folded into w3_ref / b3_ref).
        y = (jnp.dot(h2.astype(jnp.bfloat16), w3_ref[...],
                     preferred_element_type=jnp.float32) + b3_ref[...])

        # Pack 128-row sub-blocks into lane-dense (1,128) rows:
        # out[g, j] = y[g*128 + j, j]  (identity mask on VPU, sublane reduce on XLU).
        row = jax.lax.broadcasted_iota(jnp.int32, (LANE, LANE), 0)
        col = jax.lax.broadcasted_iota(jnp.int32, (LANE, LANE), 1)
        eye = (row == col).astype(jnp.float32)
        for g in range(G):  # static unroll; G <= 8 for default tiles
            blk = y[g * LANE:(g + 1) * LANE, :]               # (128, 128)
            o_ref[g:g + 1, :] = jnp.sum(blk * eye, axis=0, keepdims=True)

    return fnn_mlp_kernel


def fnn_mlp_pallas(deep_emb, w1, b1, w2, b2, w3_eff, b3_eff, *, tb):
    """deep_emb: (B_pad, D) bf16, B_pad % tb == 0, tb % 128 == 0.
    Returns packed (B_pad // 128, 128) f32."""
    B_pad, D = deep_emb.shape
    assert tb % LANE == 0 and B_pad % tb == 0
    H1 = w1.shape[1]
    H2 = w2.shape[1]
    nb = B_pad // tb
    G = tb // LANE

    # deep_emb tile spec; deeper buffering only matters with a real grid.
    if nb > 1:
        x_spec = pl.BlockSpec((tb, D), lambda i: (i, 0),
                              pipeline_mode=pl.Buffered(3))
    else:
        x_spec = pl.BlockSpec((tb, D), lambda i: (i, 0))

    out = pl.pallas_call(
        _make_fnn_mlp_kernel(G),
        out_shape=jax.ShapeDtypeStruct((B_pad // LANE, LANE), jnp.float32),
        grid_spec=pltpu.PrefetchScalarGridSpec(
            num_scalar_prefetch=0,
            grid=(nb,),
            in_specs=[
                x_spec,                                      # deep_emb tile
                pl.BlockSpec((D, H1), lambda i: (0, 0)),     # W1 (VMEM-resident)
                pl.BlockSpec((1, H1), lambda i: (0, 0)),     # b1_eff
                pl.BlockSpec((H1, H2), lambda i: (0, 0)),    # W2
                pl.BlockSpec((1, H2), lambda i: (0, 0)),     # b2
                pl.BlockSpec((H2, LANE), lambda i: (0, 0)),  # W3_eff
                pl.BlockSpec((1, LANE), lambda i: (0, 0)),   # b3_eff
            ],
            out_specs=pl.BlockSpec((G, LANE), lambda i: (i, 0)),
        ),
        compiler_params=pltpu.CompilerParams(
            dimension_semantics=("parallel",),
            vmem_limit_bytes=48 * 1024 * 1024,
        ),
    )(deep_emb, w1, b1, w2, b2, w3_eff, b3_eff)
    return out


# ---------------------------------------------------------------------------
# Parameter construction (deterministic, synthetic)
# ---------------------------------------------------------------------------
def init_params(key, field_size, feature_size, embedding_size, deep_layers, n_class):
    ks = jax.random.split(key, 10)
    D0 = 1 + field_size + field_size * embedding_size
    params = {
        "fm_bias": jax.random.normal(ks[0], (1,), jnp.float32),
        # all fields share the same vocabulary size -> stack embeddings
        "fm_first_order_emb": 0.05
        * jax.random.normal(ks[1], (field_size, feature_size, 1), jnp.float32),
        "fm_second_order_emb": 0.05
        * jax.random.normal(
            ks[2], (field_size, feature_size, embedding_size), jnp.float32
        ),
        # Linear weights stored as (in, out) so the kernel does x @ W
        "w1": 0.1 * jax.random.normal(ks[3], (D0, deep_layers[0]), jnp.float32),
        "b1": 0.1 * jax.random.normal(ks[4], (1, deep_layers[0]), jnp.float32),
        "w2": 0.1
        * jax.random.normal(ks[5], (deep_layers[0], deep_layers[1]), jnp.float32),
        "b2": 0.1 * jax.random.normal(ks[6], (1, deep_layers[1]), jnp.float32),
        "w3": 0.1 * jax.random.normal(ks[7], (deep_layers[1], n_class), jnp.float32),
        "b3": 0.1 * jax.random.normal(ks[8], (1, n_class), jnp.float32),
    }
    return params


# ---------------------------------------------------------------------------
# Full forward:  glue (padded-index vectorized gather + concat) in JAX,
#                MLP hot path + output packing in Pallas
# ---------------------------------------------------------------------------
def fnn_forward(params, Xi, Xv, *, block_b=1024):
    # Xi: (B, F, 1) int32 indices, Xv: (B, F) float32 values
    B, F, _ = Xi.shape
    idx = Xi[:, :, 0].astype(jnp.int32)                          # (B, F)
    feat = params["fm_first_order_emb"].shape[1]
    E = params["fm_second_order_emb"].shape[2]

    # Tile geometry; pad the tiny Xi/Xv BEFORE the gather so deep_emb is
    # built once at the padded size (no second HBM copy of deep_emb).
    TB, B_pad = _tile_geom(B, block_b)
    if B_pad != B:
        idx = jnp.pad(idx, ((0, B_pad - B), (0, 0)))
        Xv = jnp.pad(Xv, ((0, B_pad - B), (0, 0)))

    # ---- vectorized gather: one flattened take per embedding order --------
    offsets = (jnp.arange(F, dtype=jnp.int32) * feat)[None, :]   # (1, F)
    flat_idx = (idx + offsets).reshape(-1)                       # (B_pad*F,)

    flat_first = params["fm_first_order_emb"][:, :, 0].reshape(F * feat)
    flat_second = params["fm_second_order_emb"].reshape(F * feat, E)

    first = jnp.take(flat_first, flat_idx, axis=0).reshape(B_pad, F)
    second = jnp.take(flat_second, flat_idx, axis=0).reshape(B_pad, F, E)

    fm_first_order = first * Xv                                   # (B_pad, F)
    fm_second_order = (second * Xv[:, :, None]).reshape(B_pad, F * E)

    # fm_bias ones-column folded into b1 (algebraic identity) -> no concat column
    deep_emb = jnp.concatenate([fm_first_order, fm_second_order], axis=1)
    deep_emb = deep_emb.astype(jnp.bfloat16)                      # (B_pad, F+F*E)

    w1 = params["w1"]
    b1_eff = params["b1"] + params["fm_bias"] * w1[0:1, :]        # (1, H1)
    w1_eff = w1[1:, :].astype(jnp.bfloat16)                       # (F+F*E, H1)
    w2_bf = params["w2"].astype(jnp.bfloat16)

    # class-sum folded into last layer, broadcast over 128 lanes (all output
    # lanes identical -> the in-kernel diagonal packing is exact).
    w3 = params["w3"]                                             # (H2, C)
    w3_col = w3 @ jnp.ones((w3.shape[1], 1), jnp.float32)         # (H2, 1)
    w3_eff = jnp.broadcast_to(w3_col, (w3_col.shape[0], LANE)).astype(jnp.bfloat16)
    b3_eff = jnp.full((1, LANE), jnp.sum(params["b3"]), jnp.float32)

    packed = fnn_mlp_pallas(
        deep_emb, w1_eff, b1_eff, w2_bf, params["b2"], w3_eff, b3_eff, tb=TB
    )                                                             # (B_pad/128, 128)
    # Padded rows land at flat positions >= B (finite garbage) and are sliced
    # off; the reshape is contiguous (no strided column gather).
    return packed.reshape(-1)[:B]


# Pure-JAX f32 reference of the original (unfolded) formulation.
def fnn_forward_ref(params, Xi, Xv):
    B, F, _ = Xi.shape
    idx = Xi[:, :, 0]
    first_emb = params["fm_first_order_emb"]
    first = jnp.stack(
        [jnp.take(first_emb[f, :, 0], idx[:, f], axis=0) for f in range(F)], axis=1
    )
    fm_first_order = first * Xv
    second_emb = params["fm_second_order_emb"]
    second = jnp.stack(
        [jnp.take(second_emb[f], idx[:, f], axis=0) for f in range(F)], axis=1
    )
    fm_second_order = (second * Xv[:, :, None]).reshape(B, -1)
    fm_bias = params["fm_bias"] * jnp.ones((B, 1), jnp.float32)
    deep_emb = jnp.concatenate([fm_bias, fm_first_order, fm_second_order], axis=1)
    h1 = jnp.tanh(deep_emb @ params["w1"] + params["b1"])
    h2 = jnp.tanh(h1 @ params["w2"] + params["b2"])
    out = h2 @ params["w3"] + params["b3"]
    return jnp.sum(out, axis=1)


if __name__ == "__main__":
    # small, deterministic config
    field_size = 4
    feature_size = 10          # all fields share the same vocab size
    embedding_size = 4
    deep_layers = [32, 32]
    n_class = 1                # self.n_class is undefined in the torch module; CTR binary -> 1
    batch = 2

    key = jax.random.PRNGKey(0)
    k_params, k_xi, k_xv = jax.random.split(key, 3)

    params = init_params(
        k_params, field_size, feature_size, embedding_size, deep_layers, n_class
    )

    Xi = jax.random.randint(
        k_xi, (batch, field_size, 1), minval=0, maxval=feature_size, dtype=jnp.int32
    )
    Xv = jax.random.uniform(k_xv, (batch, field_size), dtype=jnp.float32)

    out = jax.block_until_ready(fnn_forward(params, Xi, Xv))
    ref = jax.block_until_ready(fnn_forward_ref(params, Xi, Xv))

    assert out.shape == (batch,)
    # bf16 MXU operands are an explicit, documented choice -> loose tolerance.
    assert jnp.allclose(out, ref, atol=2e-2, rtol=2e-2), (out, ref)
    print("KERNEL_OK")
</pallas_src>

<mosaic_0001>
module attributes {stable_mosaic.version = 11 : i64} {
  func.func @fnn_mlp_kernel(%arg0: i32, %arg1: memref<128x20xbf16, #tpu.memory_space<vmem>>, %arg2: memref<20x32xbf16, #tpu.memory_space<vmem>>, %arg3: memref<1x32xf32, #tpu.memory_space<vmem>>, %arg4: memref<32x32xbf16, #tpu.memory_space<vmem>>, %arg5: memref<1x32xf32, #tpu.memory_space<vmem>>, %arg6: memref<32x128xbf16, #tpu.memory_space<vmem>>, %arg7: memref<1x128xf32, #tpu.memory_space<vmem>>, %arg8: memref<1x128xf32, #tpu.memory_space<vmem>>) attributes {dimension_semantics = [#tpu.dimension_semantics<parallel>], iteration_bounds = array<i64: 1>, scalar_prefetch = 0 : i64, scratch_operands = 0 : i64, tpu.core_type = #tpu.core_type<tc>, window_params = [{transform_indices = @transform_0, window_bounds = array<i64: 128, 20>}, {pipeline_mode = #tpu.pipeline_mode<synchronous>, transform_indices = @transform_1, window_bounds = array<i64: 20, 32>}, {pipeline_mode = #tpu.pipeline_mode<synchronous>, transform_indices = @transform_2, window_bounds = array<i64: 1, 32>}, {pipeline_mode = #tpu.pipeline_mode<synchronous>, transform_indices = @transform_3, window_bounds = array<i64: 32, 32>}, {pipeline_mode = #tpu.pipeline_mode<synchronous>, transform_indices = @transform_4, window_bounds = array<i64: 1, 32>}, {pipeline_mode = #tpu.pipeline_mode<synchronous>, transform_indices = @transform_5, window_bounds = array<i64: 32, 128>}, {pipeline_mode = #tpu.pipeline_mode<synchronous>, transform_indices = @transform_6, window_bounds = array<i64: 1, 128>}, {transform_indices = @transform_7, window_bounds = array<i64: 1, 128>}]} {
    %c0 = arith.constant 0 : index
    %c0_0 = arith.constant 0 : index
    %0 = vector.load %arg1[%c0, %c0_0] : memref<128x20xbf16, #tpu.memory_space<vmem>>, vector<128x20xbf16>
    %c0_1 = arith.constant 0 : index
    %c0_2 = arith.constant 0 : index
    %1 = vector.load %arg2[%c0_1, %c0_2] : memref<20x32xbf16, #tpu.memory_space<vmem>>, vector<20x32xbf16>
    %cst = arith.constant dense<0.000000e+00> : vector<128x32xf32>
    %2 = tpu.matmul %0, %1, %cst {dimension_numbers = #tpu.dot_dimension_numbers<[1], [0], [0], [1], [0, 0, 1, 1], [], []>} : vector<128x20xbf16>, vector<20x32xbf16>, vector<128x32xf32> -> vector<128x32xf32>
    %c0_3 = arith.constant 0 : index
    %c0_4 = arith.constant 0 : index
    %3 = vector.load %arg3[%c0_3, %c0_4] : memref<1x32xf32, #tpu.memory_space<vmem>>, vector<1x32xf32>
    %4 = vector.broadcast %3 : vector<1x32xf32> to vector<128x32xf32>
    %5 = arith.addf %2, %4 : vector<128x32xf32>
    %6 = math.tanh %5 : vector<128x32xf32>
    %7 = arith.truncf %6 : vector<128x32xf32> to vector<128x32xbf16>
    %c0_5 = arith.constant 0 : index
    %c0_6 = arith.constant 0 : index
    %8 = vector.load %arg4[%c0_5, %c0_6] : memref<32x32xbf16, #tpu.memory_space<vmem>>, vector<32x32xbf16>
    %cst_7 = arith.constant dense<0.000000e+00> : vector<128x32xf32>
    %9 = tpu.matmul %7, %8, %cst_7 {dimension_numbers = #tpu.dot_dimension_numbers<[1], [0], [0], [1], [0, 0, 1, 1], [], []>} : vector<128x32xbf16>, vector<32x32xbf16>, vector<128x32xf32> -> vector<128x32xf32>
    %c0_8 = arith.constant 0 : index
    %c0_9 = arith.constant 0 : index
    %10 = vector.load %arg5[%c0_8, %c0_9] : memref<1x32xf32, #tpu.memory_space<vmem>>, vector<1x32xf32>
    %11 = vector.broadcast %10 : vector<1x32xf32> to vector<128x32xf32>
    %12 = arith.addf %9, %11 : vector<128x32xf32>
    %13 = math.tanh %12 : vector<128x32xf32>
    %14 = arith.truncf %13 : vector<128x32xf32> to vector<128x32xbf16>
    %c0_10 = arith.constant 0 : index
    %c0_11 = arith.constant 0 : index
    %15 = vector.load %arg6[%c0_10, %c0_11] : memref<32x128xbf16, #tpu.memory_space<vmem>>, vector<32x128xbf16>
    %cst_12 = arith.constant dense<0.000000e+00> : vector<128x128xf32>
    %16 = tpu.matmul %14, %15, %cst_12 {dimension_numbers = #tpu.dot_dimension_numbers<[1], [0], [0], [1], [0, 0, 1, 1], [], []>} : vector<128x32xbf16>, vector<32x128xbf16>, vector<128x128xf32> -> vector<128x128xf32>
    %c0_13 = arith.constant 0 : index
    %c0_14 = arith.constant 0 : index
    %17 = vector.load %arg7[%c0_13, %c0_14] : memref<1x128xf32, #tpu.memory_space<vmem>>, vector<1x128xf32>
    %18 = vector.broadcast %17 : vector<1x128xf32> to vector<128x128xf32>
    %19 = arith.addf %16, %18 : vector<128x128xf32>
    %20 = tpu.iota {dimensions = array<i32: 0>} : vector<128x128xi32>
    %21 = tpu.iota {dimensions = array<i32: 1>} : vector<128x128xi32>
    %22 = arith.cmpi eq, %20, %21 : vector<128x128xi32>
    %23 = arith.extui %22 : vector<128x128xi1> to vector<128x128xi32>
    %24 = arith.sitofp %23 : vector<128x128xi32> to vector<128x128xf32>
    %25 = arith.mulf %19, %24 : vector<128x128xf32>
    %cst_15 = arith.constant dense<0.000000e+00> : vector<128xf32>
    %26 = vector.multi_reduction <add>, %25, %cst_15 [0] : vector<128x128xf32> to vector<128xf32>
    %27 = vector.shape_cast %26 : vector<128xf32> to vector<1x128xf32>
    %c0_16 = arith.constant 0 : index
    %c0_17 = arith.constant 0 : index
    %28 = vector.load %arg8[%c0_16, %c0_17] : memref<1x128xf32, #tpu.memory_space<vmem>>, vector<1x128xf32>
    tpu.vector_store %arg8[%c0_16, %c0_17], %27 {strides = array<i32>} : memref<1x128xf32, #tpu.memory_space<vmem>>, vector<1x128xf32>,
    return
  }
  func.func @transform_0(%arg0: i32) -> (i32, i32) {
    %c0_i32 = arith.constant 0 : i32
    %c0_i32_0 = arith.constant 0 : i32
    return %arg0, %c0_i32 : i32, i32
  }
  func.func @transform_1(%arg0: i32) -> (i32, i32) {
    %c0_i32 = arith.constant 0 : i32
    %c0_i32_0 = arith.constant 0 : i32
    %c0_i32_1 = arith.constant 0 : i32
    return %c0_i32, %c0_i32_0 : i32, i32
  }
  func.func @transform_2(%arg0: i32) -> (i32, i32) {
    %c0_i32 = arith.constant 0 : i32
    %c0_i32_0 = arith.constant 0 : i32
    %c0_i32_1 = arith.constant 0 : i32
    return %c0_i32, %c0_i32_0 : i32, i32
  }
  func.func @transform_3(%arg0: i32) -> (i32, i32) {
    %c0_i32 = arith.constant 0 : i32
    %c0_i32_0 = arith.constant 0 : i32
    %c0_i32_1 = arith.constant 0 : i32
    return %c0_i32, %c0_i32_0 : i32, i32
  }
  func.func @transform_4(%arg0: i32) -> (i32, i32) {
    %c0_i32 = arith.constant 0 : i32
    %c0_i32_0 = arith.constant 0 : i32
    %c0_i32_1 = arith.constant 0 : i32
    return %c0_i32, %c0_i32_0 : i32, i32
  }
  func.func @transform_5(%arg0: i32) -> (i32, i32) {
    %c0_i32 = arith.constant 0 : i32
    %c0_i32_0 = arith.constant 0 : i32
    %c0_i32_1 = arith.constant 0 : i32
    return %c0_i32, %c0_i32_0 : i32, i32
  }
  func.func @transform_6(%arg0: i32) -> (i32, i32) {
    %c0_i32 = arith.constant 0 : i32
    %c0_i32_0 = arith.constant 0 : i32
    %c0_i32_1 = arith.constant 0 : i32
    return %c0_i32, %c0_i32_0 : i32, i32
  }
  func.func @transform_7(%arg0: i32) -> (i32, i32) {
    %c0_i32 = arith.constant 0 : i32
    %c0_i32_0 = arith.constant 0 : i32
    return %arg0, %c0_i32 : i32, i32
  }
}

</mosaic_0001>

<bundles_post_ra>
// kernel: tpu_custom_call.1
= control target key start
LH: loop header
LB: loop body
LE: loop exit
PB: predicated region body
PF: predicated region fallthrough
CT: control target
= control target key end

     0   :  { %vm128_vm0 = vcmask 1041408   ;;  %vm103_vm1 = vcmask 162816   ;;  %s1145_s0 = inlined_call_operand.vmem [shape: bf16[128,20], index: 0, kind: input, shape index: {}]   ;;  %s1146_s1 = inlined_call_operand.vmem [shape: bf16[20,32], index: 1, kind: input, shape index: {}]   ;;  %s1147_s2 = inlined_call_operand.vmem [shape: f32[1,32], index: 2, kind: input, shape index: {}]   ;;  %s1148_s3 = inlined_call_operand.vmem [shape: bf16[32,32], index: 3, kind: input, shape index: {}]   ;;  %s1149_s4 = inlined_call_operand.vmem [shape: f32[1,32], index: 4, kind: input, shape index: {}]   ;;  %s1150_s5 = inlined_call_operand.vmem [shape: bf16[32,128], index: 5, kind: input, shape index: {}]   ;;  %s1151_s6 = inlined_call_operand.vmem [shape: f32[1,128], index: 6, kind: input, shape index: {}]   ;;  %s1152_s7 = inlined_call_operand.hbm [shape: f32[1,128], index: 7, kind: output, shape index: {}]  }
   0x1   :  { %v840_v0 = vld [vmem:[%s1146_s1] sm:$0xff]   ;;  %v841_v1 = vld [vmem:[%s1146_s1 + $0x8] ss:$0 sps:$4 sm:$0x33]   ;;  %v844_v5 = vld [vmem:[%s1145_s0 + $0x10] sm:$0xff]  }
   0x2   :  { %v842_v2 = vld [vmem:[%s1145_s0] sm:$0xff]   ;;  %772 = vmatprep.subr.bf16.mxu0 %v840_v0  ;;  %832 = vmatprep.subr.bf16.mxu1 %v840_v0  ;;  %v130_v3 = vsel %vm128_vm0, %v841_v1, 0  ;;  %v843_v4 = vld [vmem:[%s1145_s0 + $0x8] sm:$0xff]   ;;  %v848_v8 = vld [vmem:[%s1145_s0 + $0x30] sm:$0xff]  }
   0x3   :  { %773 = vmatpush3.bf16.msra.mxu0 %v840_v0  ;;  %776 = vmatprep.mubr.msk.bf16.mxu0 %vm103_vm1, %v842_v2  ;;  %v846_v6 = vld [vmem:[%s1145_s0 + $0x20] sm:$0xff]   ;;  %v847_v7 = vld [vmem:[%s1145_s0 + $0x28] sm:$0xff]  }
   0x4   :  { %836 = vmatprep.subr.msk.bf16.mxu0 %vm128_vm0, %v841_v1  ;;  %834 = vmatpush3.bf16.msra.mxu1 %v840_v0 }
   0x5   :  { %837 = vmatprep.subr.msk.bf16.mxu1 %vm128_vm0, %v841_v1  ;;  %784 = vmatprep.mubr.msk.bf16.mxu1 %vm103_vm1, %v846_v6 }
   0x7   :  { %775 = vmatpush3.bf16.msra.mxu0 %v130_v3 }
   0x8   :  { %835 = vmatpush3.bf16.msra.mxu1 %v130_v3 }
   0xa   :  { %777 = vmatmul.mubr.msk.bf16.vlgmr.msra.gmra.mrb[0].mxu0 %vm103_vm1, %v843_v4 }
   0xb   :  { %780 = vmatprep.mubr.msk.bf16.mxu0 %vm103_vm1, %v844_v5  ;;  %785 = vmatmul.mubr.msk.bf16.vlgmr.msra.gmra.mrb[0].mxu1 %vm103_vm1, %v847_v7 }
   0xc   :  { %788 = vmatprep.mubr.msk.bf16.mxu1 %vm103_vm1, %v848_v8 }
   0xd   :  { %12 = vsyncpa [#allocation3], 0  ;;  %v845_v9 = vld [vmem:[%s1145_s0 + $0x18] sm:$0xff]   ;;  %v850_v11 = vld [vmem:[%s1148_s3] sm:$0xff]   ;;  %vm276_vm2 = vcmask 261120  }
   0xe   :  { %v849_v10 = vld [vmem:[%s1145_s0 + $0x38] sm:$0xff]   ;;  %792 = vmatprep.subr.bf16.mxu1 %v850_v11  ;;  %v851_v12 = vld [vmem:[%s1148_s3 + $0x8] sm:$0xff]   ;;  %v685_v13 = vld [vmem:[%s1147_s2] ss:$0 sm:$0xff] }
   0xf   :  { %793 = vmatpush3.bf16.msra.mxu1 %v850_v11  ;;  %v852_v6 = vld [vmem:[%s1150_s5] sm:$0xff]   ;;  %v853_v7 = vld [vmem:[%s1150_s5 + $0x8] sm:$0xff]  }
  0x10   :  { %794 = vmatprep.subr.bf16.mxu1 %v851_v12  ;;  %812 = vmatprep.subr.bf16.mxu0 %v852_v6  ;;  %v704_v8 = vld [vmem:[%s1149_s4] ss:$0 sm:$0xff] }
  0x11   :  { %813 = vmatpush3.bf16.msra.mxu0 %v852_v6  ;;  %v1065_v6 = vld [vmem:[%s1151_s6] ss:$0 sm:$0xff]  ;;  %s943_s6 = smov [#allocation2]  }
  0x12   :  { %781 = vmatmul.mubr.msk.bf16.gmra.mrb[4].mxu0 %vm103_vm1, %v845_v9  ;;  %814 = vmatprep.subr.bf16.mxu0 %v853_v7  ;;  %s677_s29 = sshll.u32 %s943_s6, 4  ;;  %s678_s29 = int_to_ptr.vmem [resolvable:$true] %s677_s29 }
  0x13   :  { %789 = vmatmul.mubr.msk.bf16.gmra.mrb[4].mxu1 %vm103_vm1, %v849_v10  ;;  %s918_s30 = scalar_lea.vmem %s678_s29, 16  ;;  %s922_s8 = scalar_lea.vmem %s678_s29, 32 }
  0x14   :  { %795 = vmatpush3.bf16.msra.mxu1 %v851_v12  ;;  %p919_p0 = scmp.ne.s32.totalorder %s678_s29, %s918_s30  ;;  %p923_p1 = scmp.lt.s32.totalorder %s678_s29, %s678_s29 }
  0x15   :  { %815 = vmatpush3.bf16.msra.mxu0 %v853_v7  ;;  %p924_p2 = scmp.lt.s32.totalorder %s922_s8, %s918_s30 }
  0x17   :  { %p925_p3 = por %p924_p2, %p923_p1 }
  0x19   :  { %p926_p4 = pnand %p925_p3, %p919_p0 }
  0xdd   :  { %v778_v14 = vpop.f32.mrb[0].mxu0 }
  0xde   :  { %v175_v15 = vadd.f32 %v778_v14, %v685_v13  ;;  %v166_v16 = vpop.f32.mrb[1].mxu0  ;;  %v786_v17 = vpop.f32.mrb[0].mxu1 }
  0xdf   :  { %v167_v18 = vadd.f32 %v685_v13, %v166_v16  ;;  %v779_v19 = vpop.f32.mrb[2].mxu0  ;;  %v198_v20 = vpop.f32.mrb[1].mxu1  ;;  %v207_v23 = vadd.f32 %v786_v17, %v685_v13 }
  0xe0   :  { %854 = vtanh.f32 %v175_v15  ;;  %v178_v21 = vadd.f32 %v779_v19, %v685_v13  ;;  %v169_v22 = vpop.f32.mrb[3].mxu0  ;;  %v787_v24 = vpop.f32.mrb[2].mxu1  ;;  %v199_v26 = vadd.f32 %v685_v13, %v198_v20 }
  0xe1   :  { %856 = vtanh.f32 %v167_v18  ;;  %v170_v25 = vadd.f32 %v685_v13, %v169_v22  ;;  %v201_v27 = vpop.f32.mrb[3].mxu1  ;;  %v210_v28 = vadd.f32 %v787_v24, %v685_v13 }
  0xe2   :  { %858 = vtanh.f32 %v178_v21  ;;  %v202_v29 = vadd.f32 %v685_v13, %v201_v27 }
  0xe3   :  { %860 = vtanh.f32 %v170_v25 }
  0xe4   :  { %862 = vtanh.f32 %v207_v23 }
  0xe5   :  { %v782_v30 = vpop.f32.mrb[4].mxu0  ;;  %864 = vtanh.f32 %v199_v26 }
  0xe6   :  { %v191_v31 = vadd.f32 %v782_v30, %v685_v13  ;;  %v182_v32 = vpop.f32.mrb[5].mxu0  ;;  %866 = vtanh.f32 %v210_v28  ;;  %v790_v33 = vpop.f32.mrb[4].mxu1 }
  0xe7   :  { %v183_v34 = vadd.f32 %v685_v13, %v182_v32  ;;  %v783_v35 = vpop.f32.mrb[6].mxu0  ;;  %868 = vtanh.f32 %v202_v29  ;;  %v214_v36 = vpop.f32.mrb[5].mxu1  ;;  %v223_v39 = vadd.f32 %v790_v33, %v685_v13 }
  0xe8   :  { %870 = vtanh.f32 %v191_v31  ;;  %v194_v37 = vadd.f32 %v783_v35, %v685_v13  ;;  %v185_v38 = vpop.f32.mrb[7].mxu0  ;;  %v791_v40 = vpop.f32.mrb[6].mxu1  ;;  %v215_v42 = vadd.f32 %v685_v13, %v214_v36 }
  0xe9   :  { %872 = vtanh.f32 %v183_v34  ;;  %v186_v41 = vadd.f32 %v685_v13, %v185_v38  ;;  %v217_v43 = vpop.f32.mrb[7].mxu1  ;;  %v226_v45 = vadd.f32 %v791_v40, %v685_v13 }
  0xea   :  { %v855_v44 = vpop.eup %854  ;;  %874 = vtanh.f32 %v194_v37  ;;  %v218_v47 = vadd.f32 %v685_v13, %v217_v43 }
  0xeb   :  { %v857_v46 = vpop.eup %856  ;;  %876 = vtanh.f32 %v186_v41 }
  0xec   :  { %v859_v48 = vpop.eup %858  ;;  %878 = vtanh.f32 %v223_v39 }
  0xed   :  { %v861_v49 = vpop.eup %860  ;;  %v246_v50 = vpack.c.bf16 %v859_v48, %v855_v44  ;;  %880 = vtanh.f32 %v215_v42 }
  0xee   :  { %v863_v51 = vpop.eup %862  ;;  %v245_v52 = vpack.c.bf16 %v861_v49, %v857_v46  ;;  %882 = vtanh.f32 %v226_v45 }
  0xef   :  { %v865_v53 = vpop.eup %864  ;;  %884 = vtanh.f32 %v218_v47 }
  0xf0   :  { %v867_v54 = vpop.eup %866  ;;  %796 = vmatprep.mubr.msk.bf16.mxu1 %vm276_vm2, %v245_v52 }
  0xf1   :  { %v869_v55 = vpop.eup %868  ;;  %797 = vmatmul.mubr.msk.bf16.vlgmr.msra.gmra.mrb[8].mxu1 %vm276_vm2, %v246_v50  ;;  %v250_v56 = vpack.c.bf16 %v867_v54, %v863_v51 }
  0xf2   :  { %v871_v57 = vpop.eup %870  ;;  %v249_v58 = vpack.c.bf16 %v869_v55, %v865_v53 }
  0xf3   :  { %v873_v59 = vpop.eup %872 }
  0xf4   :  { %v875_v60 = vpop.eup %874 }
  0xf5   :  { %v877_v61 = vpop.eup %876  ;;  %v248_v62 = vpack.c.bf16 %v875_v60, %v871_v57 }
  0xf6   :  { %v879_v63 = vpop.eup %878  ;;  %v247_v0 = vpack.c.bf16 %v877_v61, %v873_v59 }
  0xf7   :  { %v881_v1 = vpop.eup %880 }
  0xf8   :  { %v883_v2 = vpop.eup %882  ;;  %800 = vmatprep.mubr.msk.bf16.mxu1 %vm276_vm2, %v247_v0 }
  0xf9   :  { %v885_v3 = vpop.eup %884  ;;  %801 = vmatmul.mubr.msk.bf16.gmra.mrb[12].mxu1 %vm276_vm2, %v248_v62  ;;  %v252_v4 = vpack.c.bf16 %v883_v2, %v879_v63 }
  0xfa   :  { %804 = vmatprep.mubr.msk.bf16.mxu1 %vm276_vm2, %v249_v58  ;;  %v251_v5 = vpack.c.bf16 %v885_v3, %v881_v1  ;;  %v566_v1 = vlaneseq }
  0xfc   :  { %v1056_v2 = vshrl.u32 %v566_v1, 7  ;;  %v1058_v3 = vand.u32 127, %v566_v1 }
  0xfe   :  { %vm585_vm3 = vcmp.eq.s32.totalorder %v1056_v2, %v1058_v3 }
 0x101   :  { %805 = vmatmul.mubr.msk.bf16.gmra.mrb[16].mxu1 %vm276_vm2, %v250_v56 }
 0x102   :  { %808 = vmatprep.mubr.msk.bf16.mxu1 %vm276_vm2, %v251_v5  ;;  %v569_v5 = vadd.s32 16, %v1056_v2 }
 0x104   :  { %vm587_vm5 = vcmp.eq.s32.totalorder %v569_v5, %v1058_v3 }
 0x109   :  { %809 = vmatmul.mubr.msk.bf16.gmra.mrb[20].mxu1 %vm276_vm2, %v252_v4  ;;  %v568_v4 = vadd.s32 8, %v1056_v2 }
 0x10b   :  { %vm586_vm4 = vcmp.eq.s32.totalorder %v568_v4, %v1058_v3 }
 0x1c4   :  { %v798_v9 = vpop.f32.mrb[8].mxu1 }
 0x1c5   :  { %v344_v10 = vadd.f32 %v798_v9, %v704_v8  ;;  %v335_v11 = vpop.f32.mrb[9].mxu1 }
 0x1c6   :  { %v336_v12 = vadd.f32 %v704_v8, %v335_v11  ;;  %v799_v13 = vpop.f32.mrb[10].mxu1 }
 0x1c7   :  { %886 = vtanh.f32 %v344_v10  ;;  %v347_v14 = vadd.f32 %v799_v13, %v704_v8  ;;  %v338_v15 = vpop.f32.mrb[11].mxu1  ;;  %v942_v13 = vmov 0.0  }
 0x1c8   :  { %888 = vtanh.f32 %v336_v12  ;;  %v339_v16 = vadd.f32 %v704_v8, %v338_v15  ;;  %v571_v12 = vadd.s32 32, %v1056_v2 }
 0x1c9   :  { %890 = vtanh.f32 %v347_v14  ;;  %v726_v14 = vsel %vm585_vm3, 1.0, %v942_v13 }
 0x1ca   :  { %892 = vtanh.f32 %v339_v16  ;;  %v727_v16 = vsel %vm586_vm4, 1.0, %v942_v13  ;;  %vm589_vm7 = vcmp.eq.s32.totalorder %v571_v12, %v1058_v3 }
 0x1cc   :  { %v802_v17 = vpop.f32.mrb[12].mxu1 }
 0x1cd   :  { %v360_v18 = vadd.f32 %v802_v17, %v704_v8  ;;  %v351_v19 = vpop.f32.mrb[13].mxu1 }
 0x1ce   :  { %v352_v20 = vadd.f32 %v704_v8, %v351_v19  ;;  %v803_v21 = vpop.f32.mrb[14].mxu1  ;;  %v572_v19 = vadd.s32 40, %v1056_v2 }
 0x1cf   :  { %894 = vtanh.f32 %v360_v18  ;;  %v363_v22 = vadd.f32 %v803_v21, %v704_v8  ;;  %v354_v23 = vpop.f32.mrb[15].mxu1  ;;  %v573_v21 = vadd.s32 48, %v1056_v2 }
 0x1d0   :  { %896 = vtanh.f32 %v352_v20  ;;  %v355_v24 = vadd.f32 %v704_v8, %v354_v23  ;;  %v728_v20 = vsel %vm587_vm5, 1.0, %v942_v13  ;;  %vm590_vm8 = vcmp.eq.s32.totalorder %v572_v19, %v1058_v3 }
 0x1d1   :  { %v887_v25 = vpop.eup %886  ;;  %898 = vtanh.f32 %v363_v22  ;;  %vm591_vm9 = vcmp.eq.s32.totalorder %v573_v21, %v1058_v3 }
 0x1d2   :  { %v889_v26 = vpop.eup %888  ;;  %900 = vtanh.f32 %v355_v24 }
 0x1d3   :  { %v891_v27 = vpop.eup %890 }
 0x1d4   :  { %v893_v28 = vpop.eup %892  ;;  %v415_v29 = vpack.c.bf16 %v891_v27, %v887_v25  ;;  %v806_v30 = vpop.f32.mrb[16].mxu1 }
 0x1d5   :  { %v376_v31 = vadd.f32 %v806_v30, %v704_v8  ;;  %v367_v32 = vpop.f32.mrb[17].mxu1  ;;  %v414_v33 = vpack.c.bf16 %v893_v28, %v889_v26  ;;  %v574_v26 = vadd.s32 56, %v1056_v2 }
 0x1d6   :  { %v368_v34 = vadd.f32 %v704_v8, %v367_v32  ;;  %v807_v35 = vpop.f32.mrb[18].mxu1 }
 0x1d7   :  { %902 = vtanh.f32 %v376_v31  ;;  %v379_v36 = vadd.f32 %v807_v35, %v704_v8  ;;  %v370_v37 = vpop.f32.mrb[19].mxu1  ;;  %816 = vmatprep.mubr.msk.bf16.mxu0 %vm276_vm2, %v414_v33  ;;  %v730_v31 = vsel %vm589_vm7, 1.0, %v942_v13  ;;  %vm592_vm10 = vcmp.eq.s32.totalorder %v574_v26, %v1058_v3 }
 0x1d8   :  { %904 = vtanh.f32 %v368_v34  ;;  %v371_v38 = vadd.f32 %v704_v8, %v370_v37  ;;  %817 = vmatmul.mubr.msk.bf16.vlgmr.msra.gmra.mrb[8].mxu0 %vm276_vm2, %v415_v29 }
 0x1d9   :  { %v895_v39 = vpop.eup %894  ;;  %906 = vtanh.f32 %v379_v36  ;;  %v575_v36 = vadd.s32 64, %v1056_v2 }
 0x1da   :  { %v897_v40 = vpop.eup %896  ;;  %908 = vtanh.f32 %v371_v38  ;;  %v731_v38 = vsel %vm590_vm8, 1.0, %v942_v13 }
 0x1db   :  { %v899_v41 = vpop.eup %898  ;;  %vm593_vm11 = vcmp.eq.s32.totalorder %v575_v36, %v1058_v3 }
 0x1dc   :  { %v901_v42 = vpop.eup %900  ;;  %v810_v43 = vpop.f32.mrb[20].mxu1  ;;  %v417_v44 = vpack.c.bf16 %v899_v41, %v895_v39  ;;  %v576_v39 = vadd.s32 72, %v1056_v2 }
 0x1dd   :  { %v392_v45 = vadd.f32 %v810_v43, %v704_v8  ;;  %v383_v46 = vpop.f32.mrb[21].mxu1  ;;  %v416_v47 = vpack.c.bf16 %v901_v42, %v897_v40 }
 0x1de   :  { %v384_v48 = vadd.f32 %v704_v8, %v383_v46  ;;  %v811_v49 = vpop.f32.mrb[22].mxu1  ;;  %vm594_vm12 = vcmp.eq.s32.totalorder %v576_v39, %v1058_v3 }
 0x1df   :  { %910 = vtanh.f32 %v392_v45  ;;  %v395_v50 = vadd.f32 %v811_v49, %v704_v8  ;;  %v386_v51 = vpop.f32.mrb[23].mxu1  ;;  %820 = vmatprep.mubr.msk.bf16.mxu0 %vm276_vm2, %v416_v47  ;;  %v577_v45 = vadd.s32 80, %v1056_v2  ;;  %v733_v49 = vsel %vm592_vm10, 1.0, %v942_v13 }
 0x1e0   :  { %912 = vtanh.f32 %v384_v48  ;;  %v387_v52 = vadd.f32 %v704_v8, %v386_v51  ;;  %821 = vmatmul.mubr.msk.bf16.gmra.mrb[12].mxu0 %vm276_vm2, %v417_v44  ;;  %v570_v8 = vadd.s32 24, %v1056_v2  ;;  %v732_v44 = vsel %vm591_vm9, 1.0, %v942_v13 }
 0x1e1   :  { %v903_v53 = vpop.eup %902  ;;  %914 = vtanh.f32 %v395_v50  ;;  %v578_v50 = vadd.s32 88, %v1056_v2  ;;  %vm595_vm13 = vcmp.eq.s32.totalorder %v577_v45, %v1058_v3 }
 0x1e2   :  { %v905_v54 = vpop.eup %904  ;;  %916 = vtanh.f32 %v387_v52  ;;  %vm588_vm6 = vcmp.eq.s32.totalorder %v570_v8, %v1058_v3  ;;  %v581_v8 = vadd.s32 112, %v1056_v2 }
 0x1e3   :  { %v907_v55 = vpop.eup %906  ;;  %v729_v25 = vsel %vm588_vm6, 1.0, %v942_v13  ;;  %vm596_vm14 = vcmp.eq.s32.totalorder %v578_v50, %v1058_v3 }
 0x1e4   :  { %v909_v56 = vpop.eup %908  ;;  %v419_v57 = vpack.c.bf16 %v907_v55, %v903_v53  ;;  %v734_v55 = vsel %vm593_vm11, 1.0, %v942_v13  ;;  %v737_v12 = vsel %vm596_vm14, 1.0, %v942_v13  ;;  %vm599_vm1 = vcmp.eq.s32.totalorder %v581_v8, %v1058_v3 }
 0x1e5   :  { %v418_v58 = vpack.c.bf16 %v909_v56, %v905_v54 }
 0x1e7   :  { %824 = vmatprep.mubr.msk.bf16.mxu0 %vm276_vm2, %v418_v58 }
 0x1e8   :  { %825 = vmatmul.mubr.msk.bf16.gmra.mrb[16].mxu0 %vm276_vm2, %v419_v57 }
 0x1e9   :  { %v911_v59 = vpop.eup %910 }
 0x1ea   :  { %v913_v60 = vpop.eup %912 }
 0x1eb   :  { %v915_v61 = vpop.eup %914 }
 0x1ec   :  { %v917_v62 = vpop.eup %916  ;;  %v421_v63 = vpack.c.bf16 %v915_v61, %v911_v59 }
 0x1ed   :  { %v420_v0 = vpack.c.bf16 %v917_v62, %v913_v60  ;;  %v579_v60 = vadd.s32 96, %v1056_v2  ;;  %v735_v62 = vsel %vm594_vm12, 1.0, %v942_v13 }
 0x1ef   :  { %828 = vmatprep.mubr.msk.bf16.mxu0 %vm276_vm2, %v420_v0  ;;  %vm597_vm15 = vcmp.eq.s32.totalorder %v579_v60, %v1058_v3 }
 0x1f0   :  { %829 = vmatmul.mubr.msk.bf16.gmra.mrb[20].mxu0 %vm276_vm2, %v421_v63  ;;  %v580_v63 = vadd.s32 104, %v1056_v2  ;;  %v738_v19 = vsel %vm597_vm15, 1.0, %v942_v13 }
 0x1f2   :  { %vm598_vm0 = vcmp.eq.s32.totalorder %v580_v63, %v1058_v3 }
 0x2ab   :  { %v818_v7 = vpop.f32.mrb[8].mxu0 }
 0x2ac   :  { %v503_v9 = vpop.f32.mrb[9].mxu0  ;;  %v512_v17 = vadd.f32 %v818_v7, %v1065_v6  ;;  %v736_v7 = vsel %vm595_vm13, 1.0, %v942_v13 }
 0x2ad   :  { %v504_v10 = vadd.f32 %v1065_v6, %v503_v9  ;;  %v819_v11 = vpop.f32.mrb[10].mxu0 }
 0x2ae   :  { %v506_v15 = vpop.f32.mrb[11].mxu0  ;;  %v515_v23 = vadd.f32 %v819_v11, %v1065_v6  ;;  %v635_v27 = vmul.f32 %v728_v20, %v512_v17 }
 0x2af   :  { %v507_v18 = vadd.f32 %v1065_v6, %v506_v15  ;;  %v633_v22 = vmul.f32 %v726_v14, %v504_v10  ;;  %v582_v14 = vadd.s32 120, %v1056_v2  ;;  %v739_v2 = vsel %vm598_vm0, 1.0, %v942_v13 }
 0x2b0   :  { %v636_v32 = vmul.f32 %v729_v25, %v515_v23 }
 0x2b1   :  { %v634_v24 = vmul.f32 %v727_v16, %v507_v18  ;;  %vm600_vm2 = vcmp.eq.s32.totalorder %v582_v14, %v1058_v3 }
 0x2b3   :  { %v649_v28 = vadd.f32 %v634_v24, %v633_v22  ;;  %v822_v29 = vpop.f32.mrb[12].mxu0 }
 0x2b4   :  { %v519_v30 = vpop.f32.mrb[13].mxu0  ;;  %v528_v40 = vadd.f32 %v822_v29, %v1065_v6  ;;  %v740_v29 = vsel %vm599_vm1, 1.0, %v942_v13 }
 0x2b5   :  { %v650_v33 = vadd.f32 %v649_v28, %v635_v27  ;;  %v520_v34 = vadd.f32 %v1065_v6, %v519_v30  ;;  %v823_v35 = vpop.f32.mrb[14].mxu0 }
 0x2b6   :  { %v522_v37 = vpop.f32.mrb[15].mxu0  ;;  %v531_v47 = vadd.f32 %v823_v35, %v1065_v6  ;;  %v639_v51 = vmul.f32 %v732_v44, %v528_v40 }
 0x2b7   :  { %v637_v41 = vmul.f32 %v730_v31, %v520_v34  ;;  %v651_v42 = vadd.f32 %v650_v33, %v636_v32  ;;  %v523_v43 = vadd.f32 %v1065_v6, %v522_v37  ;;  %v741_v33 = vsel %vm600_vm2, 1.0, %v942_v13 }
 0x2b8   :  { %v640_v56 = vmul.f32 %v733_v49, %v531_v47 }
 0x2b9   :  { %v652_v46 = vadd.f32 %v651_v42, %v637_v41  ;;  %v638_v48 = vmul.f32 %v731_v38, %v523_v43 }
 0x2bb   :  { %v653_v52 = vadd.f32 %v652_v46, %v638_v48  ;;  %v826_v53 = vpop.f32.mrb[16].mxu0 }
 0x2bc   :  { %v535_v54 = vpop.f32.mrb[17].mxu0  ;;  %v544_v0 = vadd.f32 %v826_v53, %v1065_v6 }
 0x2bd   :  { %v654_v57 = vadd.f32 %v653_v52, %v639_v51  ;;  %v536_v58 = vadd.f32 %v1065_v6, %v535_v54  ;;  %v827_v59 = vpop.f32.mrb[18].mxu0 }
 0x2be   :  { %v538_v61 = vpop.f32.mrb[19].mxu0  ;;  %v547_v10 = vadd.f32 %v827_v59, %v1065_v6  ;;  %v643_v15 = vmul.f32 %v736_v7, %v544_v0 }
 0x2bf   :  { %v641_v1 = vmul.f32 %v734_v55, %v536_v58  ;;  %v655_v4 = vadd.f32 %v654_v57, %v640_v56  ;;  %v539_v5 = vadd.f32 %v1065_v6, %v538_v61 }
 0x2c0   :  { %v644_v20 = vmul.f32 %v737_v12, %v547_v10 }
 0x2c1   :  { %v656_v9 = vadd.f32 %v655_v4, %v641_v1  ;;  %v642_v11 = vmul.f32 %v735_v62, %v539_v5 }
 0x2c3   :  { %v657_v16 = vadd.f32 %v656_v9, %v642_v11  ;;  %v830_v17 = vpop.f32.mrb[20].mxu0 }
 0x2c4   :  { %v551_v18 = vpop.f32.mrb[21].mxu0  ;;  %v560_v25 = vadd.f32 %v830_v17, %v1065_v6 }
 0x2c5   :  { %v658_v21 = vadd.f32 %v657_v16, %v643_v15  ;;  %v552_v22 = vadd.f32 %v1065_v6, %v551_v18  ;;  %v831_v23 = vpop.f32.mrb[22].mxu0 }
 0x2c6   :  { %v554_v24 = vpop.f32.mrb[23].mxu0  ;;  %v563_v31 = vadd.f32 %v831_v23, %v1065_v6  ;;  %v647_v34 = vmul.f32 %v740_v29, %v560_v25 }
 0x2c7   :  { %v645_v26 = vmul.f32 %v738_v19, %v552_v22  ;;  %v659_v27 = vadd.f32 %v658_v21, %v644_v20  ;;  %v555_v28 = vadd.f32 %v1065_v6, %v554_v24 }
 0x2c8   :  { %v648_v3 = vmul.f32 %v741_v33, %v563_v31 }
 0x2c9   :  { %v660_v30 = vadd.f32 %v659_v27, %v645_v26  ;;  %v646_v32 = vmul.f32 %v739_v2, %v555_v28 }
 0x2cb   :  { %v661_v35 = vadd.f32 %v660_v30, %v646_v32 }
 0x2cd   :  { %v662_v36 = vadd.f32 %v661_v35, %v647_v34 }
 0x2cf   :  { %v663_v37 = vadd.f32 %v662_v36, %v648_v3 }
 0x2d1   :  { %v664_v38 = vrot.slane %v663_v37, 4 }
 0x2d3   :  { %v665_v39 = vadd.f32 %v664_v38, %v663_v37 }
 0x2d5   :  { %v666_v40 = vrot.slane %v665_v39, 2 }
 0x2d7   :  { %v667_v41 = vadd.f32 %v666_v40, %v665_v39 }
 0x2d9   :  { %v668_v42 = vrot.slane %v667_v41, 1 }
 0x2db   :  { %v669_v43 = vadd.f32 %v668_v42, %v667_v41 }
 0x2dd   :  { %670 = vst [vmem:[#allocation2] sm:$0x1] %v669_v43 }
 0x2de   :  { %929 = shalt.err (!%p926_p4)
}
 0x2df   :  { %s930_s1 = scalar_lea.hbm %s1152_s7, 16 }
 0x2e0   :  { %p931_p5 = scmp.ne.s32.totalorder %s1152_s7, %s930_s1  ;;  %p934_p6 = scmp.lt.u32.totalorder %s930_s1, %s1152_s7 }
 0x2e2   :  { %p936_p7 = pnand %p934_p6, %p931_p5 }
 0x2e4   :  { %939 = shalt.err (!%p936_p7)
}
 0x2e5   :  { %680 = dma.vmem_to_hbm [thread:$0]  %s678_s29, 16, %s1152_s7, [#allocation3]  }
 0x2e6   :  { %940 = dma.done.wait [#allocation3], 16  }
 0x2e7   :  { %941 = vsyncadd [#allocation3], 4294967280 }
 0x2e8   :  { %684 = vsyncpa [#allocation3], 1 }

</bundles_post_ra>
